<compile_context>
chip_gen: v5e
topology: v5e:2x2
jax: 0.10.0
libtpu: 0.0.40
codegen_flags: <defaults>
</compile_context>

<pallas_src>
import jax
import jax.numpy as jnp
from jax.experimental import pallas as pl
from jax.experimental.pallas import tpu as pltpu

# roll_max / pitch_max are module-level constants in the original file.
ROLL_MAX = 0.4
PITCH_MAX = 0.4

LANE = 128           # TPU lane width; hidden layers are padded to this
IN_FEATURES = 10
IN_PAD = 16          # input features padded 10 -> 16 (full last dim of block)
HIDDEN = 64
OUT_FEATURES = 2
OUT_PAD = 8          # output written as 8 lanes (cols 0..1 valid)
NUM_LAYERS = 4
TILE_B_MAX = 1024    # batch tile for large B (fits default scoped VMEM easily)


def _lidar_vel_kernel(s_ref, w1_ref, w_ref, b_ref, o_ref):
    # s_ref : (TB, 16)   f32 state (10 real features, 6 zero pad)
    # w1_ref: (16, 128)  f32 layer-1 weights (preprocess folded in)
    # w_ref : (128, 384) bf16 layers 2..4 weights (output scale folded into L4)
    # b_ref : (1, 512)   f32 biases (layer l at columns l*128:(l+1)*128)
    # o_ref : (TB, 8)    f32 output; columns 0..1 hold the result
    s = s_ref[...]

    # state[2:] = round(state[2:], decimals=2).  Features 0,1 untouched; the
    # zero-padded features 10..15 round to zero (harmless).
    # TODO(synk): torch.round(decimals=2) can differ by 1 ulp near .xx5
    # boundaries from round(x*100)/100; matches the JAX reference exactly.
    feat = jax.lax.broadcasted_iota(jnp.int32, s.shape, dimension=1)
    s = jnp.where(feat >= 2, jnp.round(s * 100.0) / 100.0, s)

    # Layer 1: f32 matmul over K=16 (tiny; keeps raw state unquantized).
    x = jnp.dot(s, w1_ref[...], preferred_element_type=jnp.float32)
    x = jnp.tanh(x + b_ref[:, :LANE])

    # Layers 2..4: bf16 operands, f32 accumulation, f32 bias / tanh.
    for layer in range(1, NUM_LAYERS):
        w = w_ref[:, (layer - 1) * LANE:layer * LANE]          # static, aligned
        b = b_ref[:, layer * LANE:(layer + 1) * LANE]
        x = jnp.dot(x.astype(jnp.bfloat16), w,
                    preferred_element_type=jnp.float32) + b
        if layer < NUM_LAYERS - 1:
            x = jnp.tanh(x)

    o_ref[...] = x[:, :OUT_PAD]


def pack_params(params):
    """Fold preprocessing + output scale into the weights and pack them into
    a (16,128) f32 layer-1 slab, a (128,384) bf16 layers-2..4 slab and a
    (1,512) f32 bias slab."""
    w1, b1, w2, b2, w3, b3, w4, b4 = params   # w: (in, out), b: (1, out)

    # Fold  x' = (x - shift) * mul  (mul = 1/div) into layer 1 (applied after
    # the nonlinear rounding, exactly as in the reference):
    #   x' @ w1 + b1 = x @ (mul[:,None]*w1) + (b1 - (shift*mul) @ w1)
    mul = jnp.concatenate(
        [jnp.ones((2,), jnp.float32), jnp.full((8,), 0.5, jnp.float32)])
    shift = jnp.concatenate(
        [jnp.zeros((2,), jnp.float32), jnp.full((8,), 2.0, jnp.float32)])
    w1f = w1 * mul[:, None]
    b1f = b1 - (shift * mul)[None, :] @ w1

    # Fold output scale [roll_max, pitch_max] into layer 4.
    scale = jnp.array([ROLL_MAX, PITCH_MAX], jnp.float32)
    w4f = w4 * scale[None, :]
    b4f = b4 * scale[None, :]

    def pad_w(w, rows, cols):
        out = jnp.zeros((rows, cols), jnp.float32)
        return out.at[:w.shape[0], :w.shape[1]].set(w)

    def pad_b(b):
        out = jnp.zeros((1, LANE), jnp.float32)
        return out.at[:, :b.shape[1]].set(b)

    w1_slab = pad_w(w1f, IN_PAD, LANE)                                  # (16, 128) f32
    w_rest = jnp.concatenate(
        [pad_w(w2, LANE, LANE), pad_w(w3, LANE, LANE), pad_w(w4f, LANE, LANE)],
        axis=1).astype(jnp.bfloat16)                                     # (128, 384) bf16
    b_slab = jnp.concatenate(
        [pad_b(b1f), pad_b(b2), pad_b(b3), pad_b(b4f)], axis=1)          # (1, 512) f32
    return w1_slab, w_rest, b_slab


def _choose_tile(B):
    if B < 128:
        return max(8, ((B + 7) // 8) * 8)          # single grid step
    if B <= 2 * TILE_B_MAX:
        half = (B + 1) // 2                        # >= 2 steps -> both v7x TCs
        return ((half + 7) // 8) * 8
    return TILE_B_MAX


def lidar_vel_forward(state, packed):
    """state: (B, 10) f32 (each row an independent state vector). Returns (B, 2)."""
    w1_slab, w_rest, b_slab = packed
    B = state.shape[0]
    tile = _choose_tile(B)
    grid = pl.cdiv(B, tile)

    # Only wrapper-side data movement: pad features 10 -> 16 (40 -> 64 B/row).
    s = jnp.pad(state.astype(jnp.float32), ((0, 0), (0, IN_PAD - IN_FEATURES)))

    cost = pl.CostEstimate(
        flops=2 * B * (IN_PAD * LANE + (NUM_LAYERS - 1) * LANE * LANE),
        transcendentals=(NUM_LAYERS - 1) * B * LANE,
        bytes_accessed=(B * IN_PAD * 4 + B * OUT_PAD * 4
                        + w1_slab.size * 4 + w_rest.size * 2 + b_slab.size * 4))

    out = pl.pallas_call(
        _lidar_vel_kernel,
        out_shape=jax.ShapeDtypeStruct((B, OUT_PAD), jnp.float32),
        grid=(grid,),
        in_specs=[
            pl.BlockSpec((tile, IN_PAD), lambda i: (i, 0)),
            pl.BlockSpec((IN_PAD, LANE), lambda i: (0, 0)),
            pl.BlockSpec((LANE, (NUM_LAYERS - 1) * LANE), lambda i: (0, 0)),
            pl.BlockSpec((1, NUM_LAYERS * LANE), lambda i: (0, 0)),
        ],
        out_specs=pl.BlockSpec((tile, OUT_PAD), lambda i: (i, 0)),
        compiler_params=pltpu.CompilerParams(
            dimension_semantics=("parallel",)),
        cost_estimate=cost,
    )(s, w1_slab, w_rest, b_slab)

    return out[:, :OUT_FEATURES]


def init_params(key):
    """Deterministic init; shapes match nn.Linear(10,64),(64,64),(64,64),(64,2).
    Weights are stored pre-transposed as (in_features, out_features)."""
    def linear(k, fan_in, fan_out):
        kw, kb = jax.random.split(k)
        bound = 1.0 / jnp.sqrt(float(fan_in))
        w = jax.random.uniform(kw, (fan_in, fan_out), jnp.float32, -bound, bound)
        b = jax.random.uniform(kb, (1, fan_out), jnp.float32, -bound, bound)
        return w, b

    k1, k2, k3, k4 = jax.random.split(key, 4)
    w1, b1 = linear(k1, IN_FEATURES, HIDDEN)
    w2, b2 = linear(k2, HIDDEN, HIDDEN)
    w3, b3 = linear(k3, HIDDEN, HIDDEN)
    w4, b4 = linear(k4, HIDDEN, OUT_FEATURES)
    return (w1, b1, w2, b2, w3, b3, w4, b4)


def reference_forward(state, params):
    """Pure-JAX f32 reference mirroring the PyTorch forward (no folding/packing)."""
    w1, b1, w2, b2, w3, b3, w4, b4 = params
    feat = jnp.arange(IN_FEATURES)[None, :]
    s = jnp.where(feat >= 2, jnp.round(state * 100.0) / 100.0, state)
    s = s - jnp.where(feat >= 2, 2.0, 0.0)
    s = s / jnp.where(feat >= 2, 2.0, 1.0)
    x = jnp.tanh(s @ w1 + b1)
    x = jnp.tanh(x @ w2 + b2)
    x = jnp.tanh(x @ w3 + b3)
    x = x @ w4 + b4
    return x * jnp.array([[ROLL_MAX, PITCH_MAX]], jnp.float32)


if __name__ == "__main__":
    key = jax.random.PRNGKey(0)
    kp, kx = jax.random.split(key)
    params = init_params(kp)
    packed = pack_params(params)

    # B = 8: aligned single step; B = 3: ragged (partial block, masked write);
    # B = 300: two grid steps (v7x dual-TC path) with a ragged last block.
    for B in (8, 3, 300):
        kx, kb = jax.random.split(kx)
        state = jax.random.uniform(kb, (B, IN_FEATURES), jnp.float32, 0.0, 4.0)

        out = jax.block_until_ready(lidar_vel_forward(state, packed))
        ref = reference_forward(state, params)

        assert out.shape == (B, OUT_FEATURES)
        # bf16 matmul operands in layers 2-4 (f32 accumulation) -> loosened tol.
        assert jnp.allclose(out, ref, atol=2e-2, rtol=2e-2), (
            B, jnp.max(jnp.abs(out - ref)))

    print("KERNEL_OK")
</pallas_src>

<mosaic_0001>
module attributes {stable_mosaic.version = 11 : i64} {
  func.func @_lidar_vel_kernel(%arg0: i32, %arg1: memref<8x16xf32, #tpu.memory_space<vmem>>, %arg2: memref<16x128xf32, #tpu.memory_space<vmem>>, %arg3: memref<128x384xbf16, #tpu.memory_space<vmem>>, %arg4: memref<1x512xf32, #tpu.memory_space<vmem>>, %arg5: memref<8x8xf32, #tpu.memory_space<vmem>>) attributes {dimension_semantics = [#tpu.dimension_semantics<parallel>], iteration_bounds = array<i64: 1>, scalar_prefetch = 0 : i64, scratch_operands = 0 : i64, tpu.core_type = #tpu.core_type<tc>, window_params = [{transform_indices = @transform_0, window_bounds = array<i64: 8, 16>}, {pipeline_mode = #tpu.pipeline_mode<synchronous>, transform_indices = @transform_1, window_bounds = array<i64: 16, 128>}, {pipeline_mode = #tpu.pipeline_mode<synchronous>, transform_indices = @transform_2, window_bounds = array<i64: 128, 384>}, {pipeline_mode = #tpu.pipeline_mode<synchronous>, transform_indices = @transform_3, window_bounds = array<i64: 1, 512>}, {transform_indices = @transform_4, window_bounds = array<i64: 8, 8>}]} {
    %c0 = arith.constant 0 : index
    %c0_0 = arith.constant 0 : index
    %0 = vector.load %arg1[%c0, %c0_0] : memref<8x16xf32, #tpu.memory_space<vmem>>, vector<8x16xf32>
    %1 = tpu.iota {dimensions = array<i32: 1>} : vector<8x16xi32>
    %c2_i32 = arith.constant 2 : i32
    %2 = vector.broadcast %c2_i32 : i32 to vector<8x16xi32>
    %3 = arith.cmpi sge, %1, %2 : vector<8x16xi32>
    %cst = arith.constant 1.000000e+02 : f32
    %4 = vector.broadcast %cst : f32 to vector<8x16xf32>
    %5 = arith.mulf %0, %4 : vector<8x16xf32>
    %6 = math.roundeven %5 : vector<8x16xf32>
    %cst_1 = arith.constant 1.000000e+02 : f32
    %7 = vector.broadcast %cst_1 : f32 to vector<8x16xf32>
    %8 = arith.divf %6, %7 : vector<8x16xf32>
    %9 = arith.select %3, %8, %0 : vector<8x16xi1>, vector<8x16xf32>
    %c0_2 = arith.constant 0 : index
    %c0_3 = arith.constant 0 : index
    %10 = vector.load %arg2[%c0_2, %c0_3] : memref<16x128xf32, #tpu.memory_space<vmem>>, vector<16x128xf32>
    %cst_4 = arith.constant dense<0.000000e+00> : vector<8x128xf32>
    %11 = tpu.matmul %9, %10, %cst_4 {dimension_numbers = #tpu.dot_dimension_numbers<[1], [0], [0], [1], [0, 0, 1, 1], [], []>} : vector<8x16xf32>, vector<16x128xf32>, vector<8x128xf32> -> vector<8x128xf32>
    %c0_5 = arith.constant 0 : index
    %c0_6 = arith.constant 0 : index
    %12 = vector.load %arg4[%c0_5, %c0_6] : memref<1x512xf32, #tpu.memory_space<vmem>>, vector<1x128xf32>
    %13 = vector.broadcast %12 : vector<1x128xf32> to vector<8x128xf32>
    %14 = arith.addf %11, %13 : vector<8x128xf32>
    %15 = math.tanh %14 : vector<8x128xf32>
    %c0_7 = arith.constant 0 : index
    %c0_8 = arith.constant 0 : index
    %16 = vector.load %arg3[%c0_7, %c0_8] : memref<128x384xbf16, #tpu.memory_space<vmem>>, vector<128x128xbf16>
    %c0_9 = arith.constant 0 : index
    %c128 = arith.constant 128 : index
    %17 = vector.load %arg4[%c0_9, %c128] : memref<1x512xf32, #tpu.memory_space<vmem>>, vector<1x128xf32>
    %18 = arith.truncf %15 : vector<8x128xf32> to vector<8x128xbf16>
    %cst_10 = arith.constant dense<0.000000e+00> : vector<8x128xf32>
    %19 = tpu.matmul %18, %16, %cst_10 {dimension_numbers = #tpu.dot_dimension_numbers<[1], [0], [0], [1], [0, 0, 1, 1], [], []>} : vector<8x128xbf16>, vector<128x128xbf16>, vector<8x128xf32> -> vector<8x128xf32>
    %20 = vector.broadcast %17 : vector<1x128xf32> to vector<8x128xf32>
    %21 = arith.addf %19, %20 : vector<8x128xf32>
    %22 = math.tanh %21 : vector<8x128xf32>
    %c0_11 = arith.constant 0 : index
    %c128_12 = arith.constant 128 : index
    %23 = vector.load %arg3[%c0_11, %c128_12] : memref<128x384xbf16, #tpu.memory_space<vmem>>, vector<128x128xbf16>
    %c0_13 = arith.constant 0 : index
    %c256 = arith.constant 256 : index
    %24 = vector.load %arg4[%c0_13, %c256] : memref<1x512xf32, #tpu.memory_space<vmem>>, vector<1x128xf32>
    %25 = arith.truncf %22 : vector<8x128xf32> to vector<8x128xbf16>
    %cst_14 = arith.constant dense<0.000000e+00> : vector<8x128xf32>
    %26 = tpu.matmul %25, %23, %cst_14 {dimension_numbers = #tpu.dot_dimension_numbers<[1], [0], [0], [1], [0, 0, 1, 1], [], []>} : vector<8x128xbf16>, vector<128x128xbf16>, vector<8x128xf32> -> vector<8x128xf32>
    %27 = vector.broadcast %24 : vector<1x128xf32> to vector<8x128xf32>
    %28 = arith.addf %26, %27 : vector<8x128xf32>
    %29 = math.tanh %28 : vector<8x128xf32>
    %c0_15 = arith.constant 0 : index
    %c256_16 = arith.constant 256 : index
    %30 = vector.load %arg3[%c0_15, %c256_16] : memref<128x384xbf16, #tpu.memory_space<vmem>>, vector<128x128xbf16>
    %c0_17 = arith.constant 0 : index
    %c384 = arith.constant 384 : index
    %31 = vector.load %arg4[%c0_17, %c384] : memref<1x512xf32, #tpu.memory_space<vmem>>, vector<1x128xf32>
    %32 = arith.truncf %29 : vector<8x128xf32> to vector<8x128xbf16>
    %cst_18 = arith.constant dense<0.000000e+00> : vector<8x128xf32>
    %33 = tpu.matmul %32, %30, %cst_18 {dimension_numbers = #tpu.dot_dimension_numbers<[1], [0], [0], [1], [0, 0, 1, 1], [], []>} : vector<8x128xbf16>, vector<128x128xbf16>, vector<8x128xf32> -> vector<8x128xf32>
    %34 = vector.broadcast %31 : vector<1x128xf32> to vector<8x128xf32>
    %35 = arith.addf %33, %34 : vector<8x128xf32>
    %36 = vector.extract_strided_slice %35 {offsets = [0, 0], sizes = [8, 8], strides = [1, 1]} : vector<8x128xf32> to vector<8x8xf32>
    %c0_19 = arith.constant 0 : index
    %c0_20 = arith.constant 0 : index
    %37 = vector.load %arg5[%c0_19, %c0_20] : memref<8x8xf32, #tpu.memory_space<vmem>>, vector<8x8xf32>
    tpu.vector_store %arg5[%c0_19, %c0_20], %36 {strides = array<i32>} : memref<8x8xf32, #tpu.memory_space<vmem>>, vector<8x8xf32>,
    return
  }
  func.func @transform_0(%arg0: i32) -> (i32, i32) {
    %c0_i32 = arith.constant 0 : i32
    %c0_i32_0 = arith.constant 0 : i32
    return %arg0, %c0_i32 : i32, i32
  }
  func.func @transform_1(%arg0: i32) -> (i32, i32) {
    %c0_i32 = arith.constant 0 : i32
    %c0_i32_0 = arith.constant 0 : i32
    %c0_i32_1 = arith.constant 0 : i32
    return %c0_i32, %c0_i32_0 : i32, i32
  }
  func.func @transform_2(%arg0: i32) -> (i32, i32) {
    %c0_i32 = arith.constant 0 : i32
    %c0_i32_0 = arith.constant 0 : i32
    %c0_i32_1 = arith.constant 0 : i32
    return %c0_i32, %c0_i32_0 : i32, i32
  }
  func.func @transform_3(%arg0: i32) -> (i32, i32) {
    %c0_i32 = arith.constant 0 : i32
    %c0_i32_0 = arith.constant 0 : i32
    %c0_i32_1 = arith.constant 0 : i32
    return %c0_i32, %c0_i32_0 : i32, i32
  }
  func.func @transform_4(%arg0: i32) -> (i32, i32) {
    %c0_i32 = arith.constant 0 : i32
    %c0_i32_0 = arith.constant 0 : i32
    return %arg0, %c0_i32 : i32, i32
  }
}

</mosaic_0001>

<bundles_post_ra>
// kernel: tpu_custom_call.1
= control target key start
LH: loop header
LB: loop body
LE: loop exit
PB: predicated region body
PF: predicated region fallthrough
CT: control target
= control target key end

     0   :  { %9 = vsyncpa [#allocation3], 0  ;;  %s721_s0 = inlined_call_operand.hbm [shape: f32[8,16], index: 0, kind: input, shape index: {}]   ;;  %s722_s1 = inlined_call_operand.hbm [shape: f32[16,128], index: 1, kind: input, shape index: {}]   ;;  %s723_s2 = inlined_call_operand.hbm [shape: bf16[128,384], index: 2, kind: input, shape index: {}]   ;;  %s724_s3 = inlined_call_operand.hbm [shape: f32[1,512], index: 3, kind: input, shape index: {}]   ;;  %s725_s4 = inlined_call_operand.hbm [shape: f32[8,8], index: 4, kind: output, shape index: {}]  }
   0x1   :  { %10 = vsyncpa [#allocation6], 0 }
   0x2   :  { %11 = vsyncpa [#allocation9], 0  ;;  %s28_s17 = sshll.u32 %s722_s1, 4  ;;  %s29_s17 = int_to_ptr.hbm [resolvable:$true] %s28_s17 }
   0x3   :  { %12 = vsyncpa [#allocation4], 0  ;;  %s671_s18 = smov [#allocation5]   ;;  %s18_s22 = sshll.u32 %s721_s0, 4  ;;  %s19_s22 = int_to_ptr.hbm [resolvable:$true] %s18_s22 }
   0x4   :  { %s30_s19 = sshll.u32 %s671_s18, 4  ;;  %s672_s23 = smov 128   ;;  %s31_s19 = int_to_ptr.vmem [resolvable:$true] %s30_s19 }
   0x5   :  { %s673_s24 = smov 8   ;;  %s674_s25 = smov [#allocation2]  }
   0x6   :  { %36 = dma.hbm_to_vmem [thread:$0]  %s29_s17, 256, %s31_s19, [#allocation6], %s672_s23, %s672_s23, %s673_s24  }
   0x7   :  { %s20_s26 = sshll.u32 %s674_s25, 4  ;;  %s41_s29 = sshll.u32 %s723_s2, 4  ;;  %s21_s26 = int_to_ptr.vmem [resolvable:$true] %s20_s26  ;;  %s42_s29 = int_to_ptr.hbm [resolvable:$true] %s41_s29 }
   0x8   :  { %23 = dma.hbm_to_vmem [thread:$0]  %s19_s22, 128, %s21_s26, [#allocation3]  }
   0x9   :  { %s675_s1 = smov [#allocation7]   ;;  %s55_s0 = sshll.u32 %s724_s3, 4  ;;  %s56_s0 = int_to_ptr.hbm [resolvable:$true] %s55_s0 }
   0xa   :  { %s43_s30 = sshll.u32 %s675_s1, 4  ;;  %s676_s7 = smov 192   ;;  %s44_s30 = int_to_ptr.vmem [resolvable:$true] %s43_s30 }
   0xb   :  { %s677_s8 = smov 12   ;;  %s678_s9 = smov [#allocation8]  }
   0xc   :  { %49 = dma.hbm_to_vmem [thread:$0]  %s42_s29, 3072, %s44_s30, [#allocation6], %s676_s7, %s676_s7, %s677_s8  }
   0xd   :  { %s57_s10 = sshll.u32 %s678_s9, 4  ;;  %s58_s10 = int_to_ptr.vmem [resolvable:$true] %s57_s10 }
   0xe   :  { %60 = dma.hbm_to_vmem [thread:$0]  %s56_s0, 64, %s58_s10, [#allocation9]  }
   0xf   :  { %663 = dma.done.wait [#allocation3], 128  }
  0x10   :  { %664 = vsyncadd [#allocation3], 4294967168 }
  0x11   :  { %665 = dma.done.wait [#allocation6], 3328  }
  0x12   :  { %666 = vsyncadd [#allocation6], 4294963968 }
  0x13   :  { %667 = dma.done.wait [#allocation9], 64  }
  0x14   :  { %668 = vsyncadd [#allocation9], 4294967232  ;;  %v679_v0 = vmov 100.0   ;;  %v93_v2 = vld [vmem:[#allocation5 + $0x8] sm:$0xff]  ;;  %v92_v3 = vld [vmem:[#allocation5] sm:$0xff]  ;;  %v78_v12 = vlaneseq  ;;  %vm98_vm3 = vcmask 130048  }
  0x15   :  { %535 = vrcp.f32 %v679_v0  ;;  %v77_v4 = vld [vmem:[#allocation2] sm:$0xff]  ;;  %116 = vmatpush.msra.mxu0 %v93_v2  ;;  %v496_v8 = vld [vmem:[#allocation7 + $0xb0] sm:$0xf0]  ;;  %v419_v10 = vld [vmem:[#allocation7 + $0x90] sm:$0xf]  ;;  %s680_s2 = smov [#allocation10]  }
  0x16   :  { %v81_v5 = vmul.f32 100.0, %v77_v4  ;;  %v423_v7 = vld [vmem:[#allocation7 + $0xa8] sm:$0xf]  ;;  %v495_v11 = vld [vmem:[#allocation7 + $0x98] sm:$0xf0]  ;;  %v79_v22 = vand.u32 127, %v78_v12 }
  0x17   :  { %v424_v9 = vor.u32 %v496_v8, %v423_v7  ;;  %117 = vmatpush.msra.mxu0 %v92_v3  ;;  %v420_v16 = vor.u32 %v495_v11, %v419_v10  ;;  %v415_v17 = vld [vmem:[#allocation7 + $0x78] sm:$0xf]  ;;  %v494_v21 = vld [vmem:[#allocation7 + $0x80] sm:$0xf0]  ;;  %v411_v28 = vld [vmem:[#allocation7 + $0x60] sm:$0xf] }
  0x18   :  { %v515_v13 = vcvt.f32.s32 %v81_v5  ;;  %v513_v15 = vand.u32 2147483647, %v81_v5  ;;  %v518_v19 = vand.u32 2147483648, %v81_v5  ;;  %v416_v25 = vor.u32 %v494_v21, %v415_v17  ;;  %v493_v29 = vld [vmem:[#allocation7 + $0x68] sm:$0xf0]  ;;  %s378_s3 = sshll.u32 %s680_s2, 4  ;;  %s379_s3 = int_to_ptr.vmem [resolvable:$true] %s378_s3 }
  0x19   :  { %192 = vmatpush.bf16.msra.mxu1 %v424_v9  ;;  %vm80_vm2 = vcmp.ge.s32.totalorder %v79_v22, 2  ;;  %v412_v32 = vor.u32 %v493_v29, %v411_v28  ;;  %v407_v33 = vld [vmem:[#allocation7 + $0x48] sm:$0xf]  ;;  %v492_v34 = vld [vmem:[#allocation7 + $0x50] sm:$0xf0]  ;;  %s380_s13 = sshll.u32 %s725_s4, 4  ;;  %s381_s13 = int_to_ptr.hbm [resolvable:$true] %s380_s13 }
  0x1a   :  { %v516_v18 = vcvt.s32.f32 %v515_v13  ;;  %vm514_vm1 = vcmp.lt.f32.partialorder %v513_v15, 8388608.0  ;;  %v408_v36 = vor.u32 %v492_v34, %v407_v33  ;;  %v403_v37 = vld [vmem:[#allocation7 + $0x30] sm:$0xf]  ;;  %v491_v38 = vld [vmem:[#allocation7 + $0x38] sm:$0xf0]  ;;  %vm371_vm4 = vcmask 64512  }
  0x1b   :  { %v536_v1 = vpop.eup %535  ;;  %v404_v39 = vor.u32 %v491_v38, %v403_v37  ;;  %v399_v40 = vld [vmem:[#allocation7 + $0x18] sm:$0xf]  ;;  %v490_v41 = vld [vmem:[#allocation7 + $0x20] sm:$0xf0]  ;;  %v395_v43 = vld [vmem:[#allocation7] sm:$0xf] }
  0x1c   :  { %v84_v6 = vmul.f32 100.0, %v536_v1  ;;  %vm88_vm0 = vweird.f32 %v536_v1  ;;  %v517_v23 = vand.u32 2147483647, %v516_v18  ;;  %v400_v42 = vor.u32 %v490_v41, %v399_v40  ;;  %v489_v44 = vld [vmem:[#allocation7 + $0x8] sm:$0xf0] }
  0x1d   :  { %193 = vmatpush.bf16.msra.mxu1 %v420_v16  ;;  %v396_v45 = vor.u32 %v489_v44, %v395_v43  ;;  %v455_v46 = vld [vmem:[#allocation7 + $0xac] sm:$0xf]  ;;  %v504_v47 = vld [vmem:[#allocation7 + $0xb4] sm:$0xf0]  ;;  %v451_v48 = vld [vmem:[#allocation7 + $0x94] sm:$0xf] }
  0x1e   :  { %v85_v14 = vsub.f32 1.0, %v84_v6  ;;  %v519_v26 = vor.u32 %v518_v19, %v517_v23  ;;  %v456_v49 = vor.u32 %v504_v47, %v455_v46  ;;  %v503_v50 = vld [vmem:[#allocation7 + $0x9c] sm:$0xf0]  ;;  %v447_v52 = vld [vmem:[#allocation7 + $0x7c] sm:$0xf] }
  0x1f   :  { %v452_v51 = vor.u32 %v503_v50, %v451_v48  ;;  %v502_v53 = vld [vmem:[#allocation7 + $0x84] sm:$0xf0]  ;;  %v443_v55 = vld [vmem:[#allocation7 + $0x64] sm:$0xf]  ;;  %v501_v56 = vld [vmem:[#allocation7 + $0x6c] sm:$0xf0] }
  0x20   :  { %v86_v20 = vmul.f32 %v536_v1, %v85_v14  ;;  %v520_v30 = vsel %vm514_vm1, %v519_v26, %v81_v5  ;;  %275 = vmatpush.bf16.msra.mxu2 %v456_v49  ;;  %v448_v54 = vor.u32 %v502_v53, %v447_v52  ;;  %v444_v57 = vor.u32 %v501_v56, %v443_v55  ;;  %v439_v58 = vld [vmem:[#allocation7 + $0x4c] sm:$0xf]  ;;  %v500_v59 = vld [vmem:[#allocation7 + $0x54] sm:$0xf0]  ;;  %v531_v61 = vld [vmem:[#allocation8] ss:$0 sm:$0xff] }
  0x21   :  { %194 = vmatpush.bf16.msra.mxu1 %v416_v25  ;;  %v440_v60 = vor.u32 %v500_v59, %v439_v58  ;;  %v435_v2 = vld [vmem:[#allocation7 + $0x34] sm:$0xf]  ;;  %v499_v3 = vld [vmem:[#allocation7 + $0x3c] sm:$0xf0]  ;;  %v431_v5 = vld [vmem:[#allocation7 + $0x1c] sm:$0xf] }
  0x22   :  { %v87_v24 = vadd.f32 %v536_v1, %v86_v20  ;;  %v498_v6 = vld [vmem:[#allocation7 + $0x24] sm:$0xf0]  ;;  %v427_v8 = vld [vmem:[#allocation7 + $0x4] sm:$0xf]  ;;  %v497_v9 = vld [vmem:[#allocation7 + $0xc] sm:$0xf0] }
  0x23   :  { %v432_v7 = vor.u32 %v498_v6, %v431_v5  ;;  %v428_v10 = vor.u32 %v497_v9, %v427_v8  ;;  %v487_v11 = vld [vmem:[#allocation7 + $0xb0] sm:$0xf]  ;;  %v512_v12 = vld [vmem:[#allocation7 + $0xb8] sm:$0xf0]  ;;  %v483_v13 = vld [vmem:[#allocation7 + $0x98] sm:$0xf] }
  0x24   :  { %v89_v27 = vsel %vm88_vm0, %v536_v1, %v87_v24  ;;  %276 = vmatpush.bf16.msra.mxu2 %v452_v51  ;;  %v488_v14 = vor.u32 %v512_v12, %v487_v11  ;;  %v511_v15 = vld [vmem:[#allocation7 + $0xa0] sm:$0xf0]  ;;  %v479_v17 = vld [vmem:[#allocation7 + $0x80] sm:$0xf]  ;;  %v510_v18 = vld [vmem:[#allocation7 + $0x88] sm:$0xf0] }
  0x25   :  { %v90_v31 = vmul.f32 %v520_v30, %v89_v27  ;;  %195 = vmatpush.bf16.msra.mxu1 %v412_v32  ;;  %v484_v16 = vor.u32 %v511_v15, %v483_v13  ;;  %v480_v19 = vor.u32 %v510_v18, %v479_v17  ;;  %v475_v20 = vld [vmem:[#allocation7 + $0x68] sm:$0xf]  ;;  %v509_v21 = vld [vmem:[#allocation7 + $0x70] sm:$0xf0]  ;;  %v471_v23 = vld [vmem:[#allocation7 + $0x50] sm:$0xf] }
  0x26   :  { %358 = vmatpush.bf16.msra.mxu3 %v488_v14  ;;  %v476_v22 = vor.u32 %v509_v21, %v475_v20  ;;  %v508_v24 = vld [vmem:[#allocation7 + $0x58] sm:$0xf0]  ;;  %v532_v26 = vld [vmem:[#allocation8 + $0x1] ss:$0 sm:$0xff]  ;;  %v467_v32 = vld [vmem:[#allocation7 + $0x38] sm:$0xf] }
  0x27   :  { %v91_v35 = vsel %vm80_vm2, %v90_v31, %v77_v4  ;;  %v436_v4 = vor.u32 %v499_v3, %v435_v2  ;;  %v472_v25 = vor.u32 %v508_v24, %v471_v23  ;;  %v507_v33 = vld [vmem:[#allocation7 + $0x40] sm:$0xf0]  ;;  %v459_v38 = vld [vmem:[#allocation7 + $0x8] sm:$0xf]  ;;  %v533_v41 = vld [vmem:[#allocation8 + $0x2] ss:$0 sm:$0xff] }
  0x28   :  { %392 = vmatmul.msk.f32.vlgmr.msra.gmra.mxu0 %vm98_vm3, %v91_v35  ;;  %277 = vmatpush.bf16.msra.mxu2 %v448_v54  ;;  %v468_v34 = vor.u32 %v507_v33, %v467_v32  ;;  %v463_v35 = vld [vmem:[#allocation7 + $0x20] sm:$0xf] }
  0x29   :  { %196 = vmatpush.bf16.msra.mxu1 %v408_v36  ;;  %v506_v36 = vld [vmem:[#allocation7 + $0x28] sm:$0xf0]  ;;  %v534_v47 = vld [vmem:[#allocation8 + $0x3] ss:$0 sm:$0xff] }
  0x2a   :  { %359 = vmatpush.bf16.msra.mxu3 %v484_v16  ;;  %v464_v37 = vor.u32 %v506_v36, %v463_v35 }
  0x2c   :  { %278 = vmatpush.bf16.msra.mxu2 %v444_v57 }
  0x2d   :  { %197 = vmatpush.bf16.msra.mxu1 %v404_v39  ;;  %v505_v39 = vld [vmem:[#allocation7 + $0x10] sm:$0xf0] }
  0x2e   :  { %360 = vmatpush.bf16.msra.mxu3 %v480_v19  ;;  %v460_v40 = vor.u32 %v505_v39, %v459_v38 }
  0x30   :  { %279 = vmatpush.bf16.msra.mxu2 %v440_v60 }
  0x31   :  { %198 = vmatpush.bf16.msra.mxu1 %v400_v42 }
  0x32   :  { %361 = vmatpush.bf16.msra.mxu3 %v476_v22 }
  0x34   :  { %280 = vmatpush.bf16.msra.mxu2 %v436_v4 }
  0x35   :  { %199 = vmatpush.bf16.msra.mxu1 %v396_v45 }
  0x36   :  { %362 = vmatpush.bf16.msra.mxu3 %v472_v25 }
  0x38   :  { %281 = vmatpush.bf16.msra.mxu2 %v432_v7 }
  0x3a   :  { %363 = vmatpush.bf16.msra.mxu3 %v468_v34 }
  0x3c   :  { %282 = vmatpush.bf16.msra.mxu2 %v428_v10 }
  0x3e   :  { %364 = vmatpush.bf16.msra.mxu3 %v464_v37 }
  0x42   :  { %365 = vmatpush.bf16.msra.mxu3 %v460_v40 }
  0xa5   :  { %v119_v62 = vpop.f32.mrf.mxu0 }
  0xa6   :  { %v120_v63 = vadd.f32 %v531_v61, %v119_v62 }
  0xa8   :  { %537 = vtanh.f32 %v120_v63 }
  0xae   :  { %v538_v0 = vpop.eup %537 }
  0xaf   :  { %v140_v1 = vpack.c.bf16 %v538_v0, %v538_v0 }
  0xb1   :  { %200 = vmatmul.bf16.vlgmr.msra.gmra.mxu1 %v140_v1 }
 0x12e   :  { %v201_v27 = vpop.f32.mrf.mxu1 }
 0x12f   :  { %v202_v28 = vadd.f32 %v532_v26, %v201_v27 }
 0x131   :  { %539 = vtanh.f32 %v202_v28 }
 0x136   :  { %v203_v29 = vpop.f32.mrf.mxu1 }
 0x137   :  { %v540_v30 = vpop.eup %539 }
 0x138   :  { %v223_v31 = vpack.c.bf16 %v540_v30, %v540_v30 }
 0x13a   :  { %283 = vmatmul.bf16.vlgmr.msra.gmra.mxu2 %v223_v31 }
 0x1bd   :  { %v284_v42 = vpop.f32.mrf.mxu2 }
 0x1be   :  { %v285_v43 = vadd.f32 %v533_v41, %v284_v42 }
 0x1c0   :  { %541 = vtanh.f32 %v285_v43 }
 0x1c5   :  { %v286_v44 = vpop.f32.mrf.mxu2 }
 0x1c6   :  { %v542_v45 = vpop.eup %541 }
 0x1c7   :  { %v306_v46 = vpack.c.bf16 %v542_v45, %v542_v45 }
 0x1c9   :  { %366 = vmatmul.bf16.vlgmr.msra.gmra.mxu3 %v306_v46 }
 0x24c   :  { %v367_v48 = vpop.f32.mrf.mxu3 }
 0x24d   :  { %v368_v49 = vadd.f32 %v534_v47, %v367_v48 }
 0x24f   :  { %372 = vst.msk [vmem:[#allocation10] sm:$0xff] %vm371_vm4, %v368_v49 }
 0x250   :  { %383 = dma.vmem_to_hbm [thread:$0]  %s379_s3, 128, %s381_s13, [#allocation4]  }
 0x254   :  { %v369_v50 = vpop.f32.mrf.mxu3 }
 0x255   :  { %669 = dma.done.wait [#allocation4], 128  }
 0x256   :  { %670 = vsyncadd [#allocation4], 4294967168 }
 0x257   :  { %388 = vsyncpa [#allocation3], 1 }
 0x258   :  { %389 = vsyncpa [#allocation6], 1 }
 0x259   :  { %390 = vsyncpa [#allocation9], 1 }
 0x25a   :  { %391 = vsyncpa [#allocation4], 1 }

</bundles_post_ra>
